<compile_context>
chip_gen: v5e
topology: v5e:2x2
jax: 0.10.0
libtpu: 0.0.40
codegen_flags: <defaults>
</compile_context>

<pallas_src>
import functools

import jax
import jax.numpy as jnp
from jax.experimental import pallas as pl
from jax.experimental.pallas import tpu as pltpu


def _round_up(x, m):
    return (x + m - 1) // m * m


def pack_params(params, dims):
    """Pack w1..w4 / b1..b4 into ONE contiguous f32 slab (done once, not per call).

    dims = (n_in, n1, n2, n3).  Weights are stored (in_features, out_features);
    w4 is stored as a row (1, n3) in plane 3 because the final layer is a VPU
    reduction, not an MXU matmul.  Each layer's bias is stored in an extra
    8-sublane band at the bottom of its weight plane (row `krows`), so the
    kernel needs only two input DMAs (x + slab).
    """
    n_in, n1, n2, n3 = dims
    nmax = _round_up(max(n1, n2, n3), 128)      # lane-dense planes
    krows = _round_up(max(n_in, n1, n2), 8)     # sublane-aligned weight rows
    bias_row = krows

    slab = jnp.zeros((4, krows + 8, nmax), jnp.float32)
    # Weights.
    slab = slab.at[0, :n_in, :n1].set(params["w1"])
    slab = slab.at[1, :n1, :n2].set(params["w2"])
    slab = slab.at[2, :n2, :n3].set(params["w3"])
    slab = slab.at[3, 0, :n3].set(params["w4"][:, 0])       # fc4 stored as a row
    # Biases (bottom band of each plane).
    slab = slab.at[0, bias_row, :n1].set(params["b1"][0])
    slab = slab.at[1, bias_row, :n2].set(params["b2"][0])
    slab = slab.at[2, bias_row, :n3].set(params["b3"][0])
    slab = slab.at[3, bias_row, 0].set(params["b4"][0, 0])
    return slab


def _clampnet_kernel(x_ref, w_ref, o_ref, *, dims, bias_row, precision):
    n_in, n1, n2, n3 = dims

    x = x_ref[...]                                   # (tb, n_in)

    # Biases loaded once, up front (JAX does not CSE broadcast_in_dim),
    # kept 2-D so they broadcast over rows.
    b1 = w_ref[0, bias_row:bias_row + 1, :n1]
    b2 = w_ref[1, bias_row:bias_row + 1, :n2]
    b3 = w_ref[2, bias_row:bias_row + 1, :n3]
    b4 = w_ref[3, bias_row:bias_row + 1, 0:1]

    # fc1..fc3: MXU matmuls (f32 accumulation) + VPU clamp(min=0).
    h = jnp.maximum(
        jnp.dot(x, w_ref[0, :n_in, :n1],
                preferred_element_type=jnp.float32, precision=precision) + b1, 0.0)
    h = jnp.maximum(
        jnp.dot(h, w_ref[1, :n1, :n2],
                preferred_element_type=jnp.float32, precision=precision) + b2, 0.0)
    h = jnp.maximum(
        jnp.dot(h, w_ref[2, :n2, :n3],
                preferred_element_type=jnp.float32, precision=precision) + b3, 0.0)

    # fc4 (out_features == 1): VPU multiply + XLU lane-reduce instead of an
    # almost-entirely-padded N=1 MXU matmul.
    w4_row = w_ref[3, 0:1, :n3]                                   # (1, n3)
    out_col = jnp.sum(h * w4_row, axis=-1, keepdims=True) + b4    # (tb, 1)

    # Lane-dense store: batch on lanes (XLU relayout, rides a free slot).
    o_ref[...] = out_col.T.astype(o_ref.dtype)                    # (1, tb)


def clampnet_forward(x, w_slab, dims, *, block_b=8192, min_blocks=1,
                     precision=jax.lax.Precision.DEFAULT):
    """x: (B, n_in) float32 -> (B, 1) float32.

    block_b:    max batch-tile rows (0.5-1 MB x-tiles amortize per-step overhead).
    min_blocks: set to 2 on v7x so the "parallel" axis feeds both TensorCores;
                keep 1 on v5e/v6e (single TC).
    precision:  MXU precision for fc1..fc3 (DEFAULT = single bf16 pass).
    """
    B, n_in = x.shape
    assert n_in == dims[0]
    bias_row = w_slab.shape[1] - 8

    if B <= block_b and min_blocks <= 1:
        tb = B                                     # single full-extent block
    else:
        # Tiled path: 128-row-aligned tiles, no wrapper-side padding of x --
        # the partial tail block is handled by Pallas (masked output write).
        tb = min(block_b, _round_up(pl.cdiv(B, max(min_blocks, 1)), 128))
    n_blocks = pl.cdiv(B, tb)

    kernel = functools.partial(_clampnet_kernel, dims=dims, bias_row=bias_row,
                               precision=precision)
    out = pl.pallas_call(
        kernel,
        out_shape=jax.ShapeDtypeStruct((1, B), jnp.float32),
        grid=(n_blocks,),
        in_specs=[
            pl.BlockSpec((tb, n_in), lambda i: (i, 0)),
            # Parameter slab: constant index map -> DMA'd once, VMEM-resident.
            pl.BlockSpec(w_slab.shape, lambda i: (0, 0, 0)),
        ],
        out_specs=pl.BlockSpec((1, tb), lambda i: (0, i)),
        compiler_params=pltpu.CompilerParams(
            dimension_semantics=("parallel",)),
    )(x, w_slab)
    return out[0].reshape(B, 1)


def init_params(key, n_in, n1, n2, n3):
    """Deterministic init matching torch.nn.Linear shapes (stored transposed: (in, out))."""
    layer_dims = [(n_in, n1), (n1, n2), (n2, n3), (n3, 1)]
    params = {}
    keys = jax.random.split(key, 2 * len(layer_dims))
    for i, (fan_in, fan_out) in enumerate(layer_dims):
        bound = 1.0 / jnp.sqrt(fan_in)
        params[f"w{i+1}"] = jax.random.uniform(
            keys[2 * i], (fan_in, fan_out), jnp.float32, -bound, bound)
        params[f"b{i+1}"] = jax.random.uniform(
            keys[2 * i + 1], (1, fan_out), jnp.float32, -bound, bound)
    return params


def clampnet_reference(x, p):
    hp = jax.lax.Precision.HIGHEST
    h = jnp.maximum(jnp.dot(x, p["w1"], precision=hp) + p["b1"], 0.0)
    h = jnp.maximum(jnp.dot(h, p["w2"], precision=hp) + p["b2"], 0.0)
    h = jnp.maximum(jnp.dot(h, p["w3"], precision=hp) + p["b3"], 0.0)
    return jnp.dot(h, p["w4"], precision=hp) + p["b4"]


if __name__ == "__main__":
    key = jax.random.PRNGKey(0)
    B, N_In, N1, N2, N3 = 8, 32, 64, 32, 16

    k_x, k_p, k_x2 = jax.random.split(key, 3)
    x = jax.random.normal(k_x, (B, N_In), jnp.float32)
    params = init_params(k_p, N_In, N1, N2, N3)

    dims = (N_In, N1, N2, N3)
    w_slab = pack_params(params, dims)   # pack once, reuse every forward call
    ref = clampnet_reference(x, params)

    # 1) Fast path: default MXU precision (single bf16 pass) -> loose tolerance.
    out = jax.block_until_ready(clampnet_forward(x, w_slab, dims))
    assert out.shape == (B, 1)
    assert jnp.allclose(out, ref, atol=5e-2, rtol=5e-2)

    # 2) Numerics path: HIGHEST precision must match the f32 reference tightly.
    out_hp = jax.block_until_ready(
        clampnet_forward(x, w_slab, dims, precision=jax.lax.Precision.HIGHEST))
    assert jnp.allclose(out_hp, ref, atol=1e-5, rtol=1e-5)

    # 3) Tiled multi-block path with a partial tail block (no wrapper padding).
    B2 = 300
    x2 = jax.random.normal(k_x2, (B2, N_In), jnp.float32)
    out2 = jax.block_until_ready(
        clampnet_forward(x2, w_slab, dims, block_b=128,
                         precision=jax.lax.Precision.HIGHEST))
    ref2 = clampnet_reference(x2, params)
    assert out2.shape == (B2, 1)
    assert jnp.allclose(out2, ref2, atol=1e-5, rtol=1e-5)

    print("KERNEL_OK")
</pallas_src>

<mosaic_0001>
module attributes {stable_mosaic.version = 11 : i64} {
  func.func @_clampnet_kernel(%arg0: i32, %arg1: memref<8x32xf32, #tpu.memory_space<vmem>>, %arg2: memref<4x72x128xf32, #tpu.memory_space<vmem>>, %arg3: memref<1x8xf32, #tpu.memory_space<vmem>>) attributes {dimension_semantics = [#tpu.dimension_semantics<parallel>], iteration_bounds = array<i64: 1>, scalar_prefetch = 0 : i64, scratch_operands = 0 : i64, tpu.core_type = #tpu.core_type<tc>, window_params = [{transform_indices = @transform_0, window_bounds = array<i64: 8, 32>}, {pipeline_mode = #tpu.pipeline_mode<synchronous>, transform_indices = @transform_1, window_bounds = array<i64: 4, 72, 128>}, {transform_indices = @transform_2, window_bounds = array<i64: 1, 8>}]} {
    %c0 = arith.constant 0 : index
    %c0_0 = arith.constant 0 : index
    %0 = vector.load %arg1[%c0, %c0_0] : memref<8x32xf32, #tpu.memory_space<vmem>>, vector<8x32xf32>
    %c0_1 = arith.constant 0 : index
    %c64 = arith.constant 64 : index
    %c0_2 = arith.constant 0 : index
    %1 = vector.load %arg2[%c0_1, %c64, %c0_2] : memref<4x72x128xf32, #tpu.memory_space<vmem>>, vector<1x1x64xf32>
    %2 = vector.shape_cast %1 : vector<1x1x64xf32> to vector<1x64xf32>
    %c1 = arith.constant 1 : index
    %c64_3 = arith.constant 64 : index
    %c0_4 = arith.constant 0 : index
    %3 = vector.load %arg2[%c1, %c64_3, %c0_4] : memref<4x72x128xf32, #tpu.memory_space<vmem>>, vector<1x1x32xf32>
    %4 = vector.shape_cast %3 : vector<1x1x32xf32> to vector<1x32xf32>
    %c2 = arith.constant 2 : index
    %c64_5 = arith.constant 64 : index
    %c0_6 = arith.constant 0 : index
    %5 = vector.load %arg2[%c2, %c64_5, %c0_6] : memref<4x72x128xf32, #tpu.memory_space<vmem>>, vector<1x1x16xf32>
    %6 = vector.shape_cast %5 : vector<1x1x16xf32> to vector<1x16xf32>
    %c3 = arith.constant 3 : index
    %c64_7 = arith.constant 64 : index
    %c0_8 = arith.constant 0 : index
    %7 = vector.load %arg2[%c3, %c64_7, %c0_8] : memref<4x72x128xf32, #tpu.memory_space<vmem>>, vector<1x1x1xf32>
    %8 = vector.shape_cast %7 : vector<1x1x1xf32> to vector<1x1xf32>
    %c0_9 = arith.constant 0 : index
    %c0_10 = arith.constant 0 : index
    %c0_11 = arith.constant 0 : index
    %9 = vector.load %arg2[%c0_9, %c0_10, %c0_11] : memref<4x72x128xf32, #tpu.memory_space<vmem>>, vector<1x32x64xf32>
    %10 = vector.shape_cast %9 : vector<1x32x64xf32> to vector<32x64xf32>
    %cst = arith.constant dense<0.000000e+00> : vector<8x64xf32>
    %11 = tpu.matmul %0, %10, %cst {dimension_numbers = #tpu.dot_dimension_numbers<[1], [0], [0], [1], [0, 0, 1, 1], [], []>} : vector<8x32xf32>, vector<32x64xf32>, vector<8x64xf32> -> vector<8x64xf32>
    %12 = vector.broadcast %2 : vector<1x64xf32> to vector<8x64xf32>
    %13 = arith.addf %11, %12 : vector<8x64xf32>
    %cst_12 = arith.constant 0.000000e+00 : f32
    %14 = vector.broadcast %cst_12 : f32 to vector<8x64xf32>
    %15 = arith.maximumf %13, %14 : vector<8x64xf32>
    %c1_13 = arith.constant 1 : index
    %c0_14 = arith.constant 0 : index
    %c0_15 = arith.constant 0 : index
    %16 = vector.load %arg2[%c1_13, %c0_14, %c0_15] : memref<4x72x128xf32, #tpu.memory_space<vmem>>, vector<1x64x32xf32>
    %17 = vector.shape_cast %16 : vector<1x64x32xf32> to vector<64x32xf32>
    %cst_16 = arith.constant dense<0.000000e+00> : vector<8x32xf32>
    %18 = tpu.matmul %15, %17, %cst_16 {dimension_numbers = #tpu.dot_dimension_numbers<[1], [0], [0], [1], [0, 0, 1, 1], [], []>} : vector<8x64xf32>, vector<64x32xf32>, vector<8x32xf32> -> vector<8x32xf32>
    %19 = vector.broadcast %4 : vector<1x32xf32> to vector<8x32xf32>
    %20 = arith.addf %18, %19 : vector<8x32xf32>
    %cst_17 = arith.constant 0.000000e+00 : f32
    %21 = vector.broadcast %cst_17 : f32 to vector<8x32xf32>
    %22 = arith.maximumf %20, %21 : vector<8x32xf32>
    %c2_18 = arith.constant 2 : index
    %c0_19 = arith.constant 0 : index
    %c0_20 = arith.constant 0 : index
    %23 = vector.load %arg2[%c2_18, %c0_19, %c0_20] : memref<4x72x128xf32, #tpu.memory_space<vmem>>, vector<1x32x16xf32>
    %24 = vector.shape_cast %23 : vector<1x32x16xf32> to vector<32x16xf32>
    %cst_21 = arith.constant dense<0.000000e+00> : vector<8x16xf32>
    %25 = tpu.matmul %22, %24, %cst_21 {dimension_numbers = #tpu.dot_dimension_numbers<[1], [0], [0], [1], [0, 0, 1, 1], [], []>} : vector<8x32xf32>, vector<32x16xf32>, vector<8x16xf32> -> vector<8x16xf32>
    %26 = vector.broadcast %6 : vector<1x16xf32> to vector<8x16xf32>
    %27 = arith.addf %25, %26 : vector<8x16xf32>
    %cst_22 = arith.constant 0.000000e+00 : f32
    %28 = vector.broadcast %cst_22 : f32 to vector<8x16xf32>
    %29 = arith.maximumf %27, %28 : vector<8x16xf32>
    %c3_23 = arith.constant 3 : index
    %c0_24 = arith.constant 0 : index
    %c0_25 = arith.constant 0 : index
    %30 = vector.load %arg2[%c3_23, %c0_24, %c0_25] : memref<4x72x128xf32, #tpu.memory_space<vmem>>, vector<1x1x16xf32>
    %31 = vector.shape_cast %30 : vector<1x1x16xf32> to vector<1x16xf32>
    %32 = vector.broadcast %31 : vector<1x16xf32> to vector<8x16xf32>
    %33 = arith.mulf %29, %32 : vector<8x16xf32>
    %cst_26 = arith.constant dense<0.000000e+00> : vector<8xf32>
    %34 = vector.multi_reduction <add>, %33, %cst_26 [1] : vector<8x16xf32> to vector<8xf32>
    %35 = vector.shape_cast %34 : vector<8xf32> to vector<8x1xf32>
    %36 = vector.broadcast %8 : vector<1x1xf32> to vector<8x1xf32>
    %37 = arith.addf %35, %36 : vector<8x1xf32>
    %38 = tpu.transpose %37, [1, 0] : vector<8x1xf32> -> vector<1x8xf32>
    %c0_27 = arith.constant 0 : index
    %c0_28 = arith.constant 0 : index
    %39 = vector.load %arg3[%c0_27, %c0_28] : memref<1x8xf32, #tpu.memory_space<vmem>>, vector<1x8xf32>
    tpu.vector_store %arg3[%c0_27, %c0_28], %38 {strides = array<i32>} : memref<1x8xf32, #tpu.memory_space<vmem>>, vector<1x8xf32>,
    return
  }
  func.func @transform_0(%arg0: i32) -> (i32, i32) {
    %c0_i32 = arith.constant 0 : i32
    %c0_i32_0 = arith.constant 0 : i32
    return %arg0, %c0_i32 : i32, i32
  }
  func.func @transform_1(%arg0: i32) -> (i32, i32, i32) {
    %c0_i32 = arith.constant 0 : i32
    %c0_i32_0 = arith.constant 0 : i32
    %c0_i32_1 = arith.constant 0 : i32
    %c0_i32_2 = arith.constant 0 : i32
    return %c0_i32, %c0_i32_0, %c0_i32_1 : i32, i32, i32
  }
  func.func @transform_2(%arg0: i32) -> (i32, i32) {
    %c0_i32 = arith.constant 0 : i32
    %c0_i32_0 = arith.constant 0 : i32
    return %c0_i32, %arg0 : i32, i32
  }
}

</mosaic_0001>

<bundles_post_ra>
// kernel: tpu_custom_call.1
= control target key start
LH: loop header
LB: loop body
LE: loop exit
PB: predicated region body
PF: predicated region fallthrough
CT: control target
= control target key end

     0   :  { %7 = vsyncpa [#allocation3], 0  ;;  %s327_s0 = inlined_call_operand.hbm [shape: f32[8,32], index: 0, kind: input, shape index: {}]   ;;  %s328_s1 = inlined_call_operand.hbm [shape: f32[4,72,128], index: 1, kind: input, shape index: {}]   ;;  %s329_s2 = inlined_call_operand.hbm [shape: f32[1,8], index: 2, kind: output, shape index: {}]  }
   0x1   :  { %8 = vsyncpa [#allocation6], 0 }
   0x2   :  { %9 = vsyncpa [#allocation4], 0  ;;  %s15_s11 = sshll.u32 %s327_s0, 4  ;;  %s296_s12 = smov [#allocation2]   ;;  %s16_s11 = int_to_ptr.hbm [resolvable:$true] %s15_s11 }
   0x3   :  { %s17_s13 = sshll.u32 %s296_s12, 4  ;;  %s25_s16 = sshll.u32 %s328_s1, 4  ;;  %s18_s13 = int_to_ptr.vmem [resolvable:$true] %s17_s13  ;;  %s26_s16 = int_to_ptr.hbm [resolvable:$true] %s25_s16 }
   0x4   :  { %20 = dma.hbm_to_vmem [thread:$0]  %s16_s11, 128, %s18_s13, [#allocation3]  }
   0x5   :  { %s297_s17 = smov [#allocation5]   ;;  %s298_s19 = smov 128  }
   0x6   :  { %s27_s18 = sshll.u32 %s297_s17, 4  ;;  %s299_s20 = smov 8   ;;  %s28_s18 = int_to_ptr.vmem [resolvable:$true] %s27_s18 }
   0x7   :  { %33 = dma.hbm_to_vmem [thread:$0]  %s26_s16, 4608, %s28_s18, [#allocation6], %s298_s19, %s298_s19, %s299_s20  }
   0x8   :  { %290 = dma.done.wait [#allocation3], 128  }
   0x9   :  { %291 = vsyncadd [#allocation3], 4294967168 }
   0xa   :  { %292 = dma.done.wait [#allocation6], 4608  }
   0xb   :  { %293 = vsyncadd [#allocation6], 4294962688  ;;  %v53_v0 = vld [vmem:[#allocation5 + $0x18] sm:$0xff]  ;;  %v52_v1 = vld [vmem:[#allocation5 + $0x10] sm:$0xff]  ;;  %vm55_vm0 = vcmask 261120   ;;  %vm89_vm1 = vcmask 523264  }
   0xc   :  { %71 = vmatpush.msra.mxu0 %v53_v0  ;;  %v87_v2 = vld [vmem:[#allocation5 + $0x80] sm:$0xff]  ;;  %v51_v3 = vld [vmem:[#allocation5 + $0x8] sm:$0xff]  ;;  %v86_v4 = vld [vmem:[#allocation5 + $0x78] sm:$0xff]  ;;  %vm146_vm2 = vcmask 130048   ;;  %s300_s0 = smov [#allocation7]   ;;  %s193_s23 = sshll.u32 %s329_s2, 4  ;;  %s194_s23 = int_to_ptr.hbm [resolvable:$true] %s193_s23 }
   0xd   :  { %101 = vmatpush.msra.mxu1 %v87_v2  ;;  %v50_v5 = vld [vmem:[#allocation5] sm:$0xff]  ;;  %v85_v6 = vld [vmem:[#allocation5 + $0x70] sm:$0xff]  ;;  %v42_v7 = vld [vmem:[#allocation2] sm:$0xff]  ;;  %s191_s1 = sshll.u32 %s300_s0, 4  ;;  %vm184_vm3 = vcmask 57344   ;;  %s192_s1 = int_to_ptr.vmem [resolvable:$true] %s191_s1 }
   0xe   :  { %72 = vmatpush.msra.mxu0 %v52_v1  ;;  %v84_v8 = vld [vmem:[#allocation5 + $0x68] sm:$0xff]  ;;  %v83_v9 = vld [vmem:[#allocation5 + $0x60] sm:$0xff]  ;;  %v82_v10 = vld [vmem:[#allocation5 + $0x58] sm:$0xff] }
   0xf   :  { %102 = vmatpush.msra.mxu1 %v86_v4  ;;  %v81_v11 = vld [vmem:[#allocation5 + $0x50] sm:$0xff]  ;;  %v80_v12 = vld [vmem:[#allocation5 + $0x48] sm:$0xff]  ;;  %v213_v14 = vld [vmem:[#allocation5 + $0x40] ss:$0 sm:$0xff] }
  0x10   :  { %73 = vmatpush.msra.mxu0 %v51_v3  ;;  %v117_v13 = vld [vmem:[#allocation5 + $0xa8] sm:$0xff]  ;;  %v116_v18 = vld [vmem:[#allocation5 + $0xa0] sm:$0xff]  ;;  %v115_v19 = vld [vmem:[#allocation5 + $0x98] sm:$0xff] }
  0x11   :  { %103 = vmatpush.msra.mxu1 %v85_v6  ;;  %134 = vmatpush.msra.mxu2 %v117_v13  ;;  %v114_v20 = vld [vmem:[#allocation5 + $0x90] sm:$0xff]  ;;  %v214_v21 = vld [vmem:[#allocation5 + $0x88] ss:$0 sm:$0xff]  ;;  %v216_v28 = vld [vmem:[#allocation5 + $0xd8] ss:$0 sm:$0xff] }
  0x12   :  { %74 = vmatpush.msra.mxu0 %v50_v5  ;;  %v215_v25 = vld [vmem:[#allocation5 + $0xd0] ss:$0 sm:$0xff]  ;;  %v217_v32 = vld [vmem:[#allocation5 + $0x118] ss:$0 sm:$0xff] }
  0x13   :  { %204 = vmatmul.msk.f32.vlgmr.msra.gmra.mxu0 %vm55_vm0, %v42_v7  ;;  %104 = vmatpush.msra.mxu1 %v84_v8 }
  0x14   :  { %135 = vmatpush.msra.mxu2 %v116_v18 }
  0x15   :  { %105 = vmatpush.msra.mxu1 %v83_v9 }
  0x16   :  { %136 = vmatpush.msra.mxu2 %v115_v19 }
  0x17   :  { %106 = vmatpush.msra.mxu1 %v82_v10 }
  0x18   :  { %137 = vmatpush.msra.mxu2 %v114_v20 }
  0x19   :  { %107 = vmatpush.msra.mxu1 %v81_v11 }
  0x1b   :  { %108 = vmatpush.msra.mxu1 %v80_v12 }
  0x90   :  { %v76_v15 = vpop.f32.mrf.mxu0 }
  0x91   :  { %v77_v16 = vadd.f32 %v213_v14, %v76_v15 }
  0x93   :  { %v79_v17 = vmax.f32 %v77_v16, 0.0 }
  0x95   :  { %205 = vmatmul.msk.f32.vlgmr.msra.gmra.mxu1 %vm89_vm1, %v79_v17 }
 0x112   :  { %v110_v22 = vpop.f32.mrf.mxu1 }
 0x113   :  { %v111_v23 = vadd.f32 %v214_v21, %v110_v22 }
 0x115   :  { %v113_v24 = vmax.f32 %v111_v23, 0.0 }
 0x117   :  { %206 = vmatmul.msk.f32.vlgmr.msra.gmra.mxu2 %vm55_vm0, %v113_v24 }
 0x19a   :  { %v139_v26 = vpop.f32.mrf.mxu2 }
 0x19b   :  { %v140_v27 = vadd.f32 %v215_v25, %v139_v26 }
 0x19d   :  { %v142_v29 = vmax.f32 %v140_v27, 0.0 }
 0x19f   :  { %v145_v30 = vmul.f32 %v216_v28, %v142_v29 }
 0x1a1   :  { %v147_v31 = vsel %vm146_vm2, %v145_v30, 0.0 }
 0x1a2   :  { %148 = vadd.xlane.f32.xlu0 %v147_v31 }
 0x215   :  { %v149_v33 = vpop.xlane.xlu0 %148 }
 0x216   :  { %v151_v34 = vadd.f32 %v217_v32, %v149_v33 }
 0x218   :  { %152 = vxpose.xlu0.b32.start.end [1/1] (short) (narrow) %v151_v34, 8 }
 0x2bc   :  { %v168_v35 = vpop.trf.xlu0 }
 0x2bd   :  { %185 = vst.msk [vmem:[#allocation7] sm:$0x1] %vm184_vm3, %v168_v35 }
 0x2be   :  { %196 = dma.vmem_to_hbm [thread:$0]  %s192_s1, 16, %s194_s23, [#allocation4]  }
 0x2bf   :  { %294 = dma.done.wait [#allocation4], 16  }
 0x2c0   :  { %295 = vsyncadd [#allocation4], 4294967280 }
 0x2c1   :  { %201 = vsyncpa [#allocation3], 1 }
 0x2c2   :  { %202 = vsyncpa [#allocation6], 1 }
 0x2c3   :  { %203 = vsyncpa [#allocation4], 1 }

</bundles_post_ra>
